<compile_context>
chip_gen: v6e
topology: v6e:2x2x1
jax: 0.10.0
libtpu: 0.0.40
codegen_flags: <defaults>
</compile_context>

<pallas_src>
import functools

import jax
import jax.numpy as jnp
from jax.experimental import pallas as pl
from jax.experimental.pallas import tpu as pltpu

LANES = 128
MAX_ROW_TILE = 2048  # 2048 x 128 f32 = 1 MiB per input per block


def _wmse_kernel(p_ref, t_ref, o_ref, *, alpha, valid_rows, row_tile, ragged):
    # One grid step: compute the weighted squared error for this block and
    # emit an (8, 128) partial sum into this block's private output slot.
    p = p_ref[...].astype(jnp.float32)
    t = t_ref[...].astype(jnp.float32)
    w = jnp.where(jnp.abs(t) > alpha, jnp.float32(9.0), jnp.float32(1.0))
    d = p - t
    sq = d * d * w  # (row_tile, LANES)

    if ragged:
        # Last block may extend past the array; mask out-of-range rows
        # (their VMEM contents are unspecified).
        row0 = pl.program_id(0) * row_tile
        row_ids = row0 + jax.lax.broadcasted_iota(jnp.int32, sq.shape, 0)
        sq = jnp.where(row_ids < valid_rows, sq, jnp.float32(0.0))

    # Tile-aligned reshape (row_tile, 128) -> (row_tile//8, 8, 128) is a
    # layout no-op; the sum over the leading axis is elementwise VPU work.
    part = sq.reshape(row_tile // 8, 8, LANES).sum(axis=0)  # (8, 128)
    o_ref[0] = part


def weighted_mse_loss(prediction, target, alpha=0.4):
    """Pallas implementation of WeightedMSELoss.forward. Returns (loss, prediction)."""
    assert prediction.shape == target.shape
    n_elems = prediction.size

    # Flatten (free for contiguous arrays); keep native dtype on the wire.
    p_flat = prediction.reshape(-1)
    t_flat = target.reshape(-1)

    # Lane-align only (and ensure at least one (8,128) tile). Padded zeros
    # contribute exactly 0 to the sum (diff 0, weight 1). This copy only
    # happens when n_elems is not already a multiple of 128.
    min_len = 8 * LANES
    aligned = max(min_len, ((n_elems + LANES - 1) // LANES) * LANES)
    if aligned != n_elems:
        p_flat = jnp.pad(p_flat, (0, aligned - n_elems))
        t_flat = jnp.pad(t_flat, (0, aligned - n_elems))

    rows = aligned // LANES
    p2d = p_flat.reshape(rows, LANES)
    t2d = t_flat.reshape(rows, LANES)

    # Block rows: multiple of 8, <= rows, capped at MAX_ROW_TILE.
    row_tile = min(MAX_ROW_TILE, (rows // 8) * 8)
    num_blocks = pl.cdiv(rows, row_tile)
    ragged = (rows % row_tile) != 0

    kernel = functools.partial(
        _wmse_kernel,
        alpha=float(alpha),
        valid_rows=rows,
        row_tile=row_tile,
        ragged=ragged,
    )

    partials = pl.pallas_call(
        kernel,
        out_shape=jax.ShapeDtypeStruct((num_blocks, 8, LANES), jnp.float32),
        grid_spec=pltpu.PrefetchScalarGridSpec(
            num_scalar_prefetch=0,
            grid=(num_blocks,),
            in_specs=[
                pl.BlockSpec((row_tile, LANES), lambda i: (i, 0)),
                pl.BlockSpec((row_tile, LANES), lambda i: (i, 0)),
            ],
            out_specs=pl.BlockSpec((1, 8, LANES), lambda i: (i, 0, 0)),
        ),
        compiler_params=pltpu.CompilerParams(
            dimension_semantics=("parallel",),
        ),
    )(p2d, t2d)

    # Tiny final reduction over per-block partial sums; divide by the TRUE
    # element count (padding contributed 0 to the numerator).
    loss = jnp.sum(partials) / jnp.float32(n_elems)
    return loss, prediction


def _reference(prediction, target, alpha=0.4):
    w = jnp.where(jnp.abs(target) > alpha, 9.0, 1.0)
    return jnp.mean((prediction - target) ** 2 * w)


if __name__ == "__main__":
    key = jax.random.PRNGKey(0)
    kp, kt, kp2, kt2 = jax.random.split(key, 4)

    # Small NCHW shape consistent with the module's typical usage.
    shape = (2, 4, 16, 16)
    prediction = jax.random.normal(kp, shape, dtype=jnp.float32)
    target = jax.random.normal(kt, shape, dtype=jnp.float32)

    loss, pred_out = weighted_mse_loss(prediction, target, alpha=0.4)
    loss = jax.block_until_ready(loss)
    pred_out = jax.block_until_ready(pred_out)

    loss_ref = _reference(prediction, target, alpha=0.4)
    assert jnp.allclose(loss, loss_ref, rtol=1e-5, atol=1e-6), (loss, loss_ref)
    assert jnp.array_equal(pred_out, prediction)

    # Second check: non-lane-aligned size exercising the ragged-block mask.
    shape2 = (3, 5, 7, 11)
    p2 = jax.random.normal(kp2, shape2, dtype=jnp.float32)
    t2 = jax.random.normal(kt2, shape2, dtype=jnp.float32)
    loss2, _ = weighted_mse_loss(p2, t2, alpha=0.4)
    loss2 = jax.block_until_ready(loss2)
    loss2_ref = _reference(p2, t2, alpha=0.4)
    assert jnp.allclose(loss2, loss2_ref, rtol=1e-5, atol=1e-6), (loss2, loss2_ref)

    print("KERNEL_OK")
</pallas_src>

<mosaic_0001>
module attributes {stable_mosaic.version = 11 : i64} {
  func.func @_wmse_kernel(%arg0: i32, %arg1: memref<16x128xf32, #tpu.memory_space<vmem>>, %arg2: memref<16x128xf32, #tpu.memory_space<vmem>>, %arg3: memref<1x8x128xf32, #tpu.memory_space<vmem>>) attributes {dimension_semantics = [#tpu.dimension_semantics<parallel>], iteration_bounds = array<i64: 1>, scalar_prefetch = 0 : i64, scratch_operands = 0 : i64, tpu.core_type = #tpu.core_type<tc>, window_params = [{transform_indices = @transform_0, window_bounds = array<i64: 16, 128>}, {transform_indices = @transform_1, window_bounds = array<i64: 16, 128>}, {transform_indices = @transform_2, window_bounds = array<i64: 1, 8, 128>}]} {
    %c0 = arith.constant 0 : index
    %c0_0 = arith.constant 0 : index
    %0 = vector.load %arg1[%c0, %c0_0] : memref<16x128xf32, #tpu.memory_space<vmem>>, vector<16x128xf32>
    %c0_1 = arith.constant 0 : index
    %c0_2 = arith.constant 0 : index
    %1 = vector.load %arg2[%c0_1, %c0_2] : memref<16x128xf32, #tpu.memory_space<vmem>>, vector<16x128xf32>
    %2 = math.absf %1 : vector<16x128xf32>
    %cst = arith.constant 4.000000e-01 : f32
    %3 = vector.broadcast %cst : f32 to vector<16x128xf32>
    %4 = arith.cmpf ogt, %2, %3 : vector<16x128xf32>
    %cst_3 = arith.constant 9.000000e+00 : f32
    %cst_4 = arith.constant 1.000000e+00 : f32
    %5 = vector.broadcast %cst_3 : f32 to vector<16x128xf32>
    %6 = vector.broadcast %cst_4 : f32 to vector<16x128xf32>
    %7 = arith.select %4, %5, %6 : vector<16x128xi1>, vector<16x128xf32>
    %8 = arith.subf %0, %1 : vector<16x128xf32>
    %9 = arith.mulf %8, %8 : vector<16x128xf32>
    %10 = arith.mulf %9, %7 : vector<16x128xf32>
    %11 = vector.shape_cast %10 : vector<16x128xf32> to vector<2x8x128xf32>
    %cst_5 = arith.constant dense<0.000000e+00> : vector<8x128xf32>
    %12 = vector.multi_reduction <add>, %11, %cst_5 [0] : vector<2x8x128xf32> to vector<8x128xf32>
    %c0_6 = arith.constant 0 : index
    %c0_7 = arith.constant 0 : index
    %c0_8 = arith.constant 0 : index
    %13 = vector.load %arg3[%c0_6, %c0_7, %c0_8] : memref<1x8x128xf32, #tpu.memory_space<vmem>>, vector<1x8x128xf32>
    %14 = vector.shape_cast %13 : vector<1x8x128xf32> to vector<8x128xf32>
    %15 = vector.shape_cast %12 : vector<8x128xf32> to vector<1x8x128xf32>
    tpu.vector_store %arg3[%c0_6, %c0_7, %c0_8], %15 {strides = array<i32>} : memref<1x8x128xf32, #tpu.memory_space<vmem>>, vector<1x8x128xf32>,
    return
  }
  func.func @transform_0(%arg0: i32) -> (i32, i32) {
    %c0_i32 = arith.constant 0 : i32
    %c0_i32_0 = arith.constant 0 : i32
    return %arg0, %c0_i32 : i32, i32
  }
  func.func @transform_1(%arg0: i32) -> (i32, i32) {
    %c0_i32 = arith.constant 0 : i32
    %c0_i32_0 = arith.constant 0 : i32
    return %arg0, %c0_i32 : i32, i32
  }
  func.func @transform_2(%arg0: i32) -> (i32, i32, i32) {
    %c0_i32 = arith.constant 0 : i32
    %c0_i32_0 = arith.constant 0 : i32
    %c0_i32_1 = arith.constant 0 : i32
    return %arg0, %c0_i32, %c0_i32_0 : i32, i32, i32
  }
}

</mosaic_0001>

<bundles_post_ra>
// kernel: tpu_custom_call.1
= control target key start
LH: loop header
LB: loop body
LE: loop exit
PB: predicated region body
PF: predicated region fallthrough
CT: control target
= control target key end

     0   :  { %7 = vsyncpa [#allocation3], 0  ;;  %s176_s0 = inlined_call_operand.hbm [shape: f32[16,128], index: 0, kind: input, shape index: {}]   ;;  %s177_s1 = inlined_call_operand.hbm [shape: f32[16,128], index: 1, kind: input, shape index: {}]   ;;  %s178_s2 = inlined_call_operand.hbm [shape: f32[1,8,128], index: 2, kind: output, shape index: {}]  }
   0x1   :  { %8 = vsyncpa [#allocation6], 0 }
   0x2   :  { %9 = vsyncpa [#allocation4], 0  ;;  %s146_s9 = smov [#allocation2]  }
   0x3   :  { %s15_s10 = sshll.u32 %s146_s9, 4  ;;  %s16_s10 = int_to_ptr.vmem [resolvable:$true] %s15_s10 }
   0x4   :  { %s88_s11 = scalar_lea.vmem %s16_s10, 256  ;;  %p93_p1 = scmp.lt.s32.totalorder %s16_s10, %s16_s10 }
   0x5   :  { %p89_p0 = scmp.ne.s32.totalorder %s16_s10, %s88_s11  ;;  %p94_p2 = scmp.lt.s32.totalorder %s88_s11, %s88_s11 }
   0x7   :  { %p95_p3 = por %p94_p2, %p93_p1 }
   0x9   :  { %p96_p4 = pnand %p95_p3, %p89_p0 }
   0xb   :  { %99 = shalt.err (!%p96_p4)
}
   0xc   :  { %s147_s12 = smov 128   ;;  %s148_s13 = smov 8  }
   0xd   :  { %21 = dma.hbm_to_vmem [thread:$0]  %s176_s0, 256, %s16_s10, [#allocation3], %s147_s12, %s147_s12, %s148_s13  }
   0xe   :  { %s149_s16 = smov [#allocation5]  }
   0xf   :  { %s27_s17 = sshll.u32 %s149_s16, 4  ;;  %s28_s17 = int_to_ptr.vmem [resolvable:$true] %s27_s17 }
  0x10   :  { %s108_s18 = scalar_lea.vmem %s28_s17, 256  ;;  %p113_p6 = scmp.lt.s32.totalorder %s28_s17, %s28_s17 }
  0x11   :  { %p109_p5 = scmp.ne.s32.totalorder %s28_s17, %s108_s18  ;;  %p114_p7 = scmp.lt.s32.totalorder %s108_s18, %s108_s18 }
  0x13   :  { %p115_p8 = por %p114_p7, %p113_p6 }
  0x15   :  { %p116_p9 = pnand %p115_p8, %p109_p5 }
  0x17   :  { %119 = shalt.err (!%p116_p9)
}
  0x18   :  { %33 = dma.hbm_to_vmem [thread:$0]  %s177_s1, 256, %s28_s17, [#allocation6], %s147_s12, %s147_s12, %s148_s13  }
  0x19   :  { %140 = dma.done.wait [#allocation3], 256  }
  0x1a   :  { %141 = vsyncadd [#allocation3], 4294967040 }
  0x1b   :  { %142 = dma.done.wait [#allocation6], 256  }
  0x1c   :  { %143 = vsyncadd [#allocation6], 4294967040  ;;  %v40_v0 = vld [vmem:[#allocation2] sm:$0xff]  ;;  %v41_v1 = vld [vmem:[#allocation2 + $0x8] sm:$0xff]  ;;  %v150_v9 = vmov 1.0   ;;  %s151_s0 = smov [#allocation7]  }
  0x1d   :  { %v42_v2 = vld [vmem:[#allocation5] sm:$0xff]  ;;  %v43_v3 = vld [vmem:[#allocation5 + $0x8] sm:$0xff]  ;;  %s64_s1 = sshll.u32 %s151_s0, 4  ;;  %s65_s1 = int_to_ptr.vmem [resolvable:$true] %s64_s1 }
  0x1e   :  { %v44_v4 = vand.u32 2147483647, %v42_v2  ;;  %v50_v5 = vsub.f32 %v40_v0, %v42_v2  ;;  %v45_v6 = vand.u32 2147483647, %v43_v3  ;;  %v51_v7 = vsub.f32 %v41_v1, %v43_v3  ;;  %s120_s21 = scalar_lea.vmem %s65_s1, 128  ;;  %p125_p11 = scmp.lt.s32.totalorder %s65_s1, %s65_s1 }
  0x1f   :  { %p121_p10 = scmp.ne.s32.totalorder %s65_s1, %s120_s21  ;;  %p126_p12 = scmp.lt.s32.totalorder %s120_s21, %s120_s21 }
  0x20   :  { %vm46_vm0 = vcmp.gt.f32.partialorder %v44_v4, 0.4  ;;  %v52_v8 = vmul.f32 %v50_v5, %v50_v5  ;;  %vm47_vm1 = vcmp.gt.f32.partialorder %v45_v6, 0.4  ;;  %v53_v11 = vmul.f32 %v51_v7, %v51_v7 }
  0x21   :  { %v48_v10 = vsel %vm46_vm0, 9.0, %v150_v9  ;;  %v49_v12 = vsel %vm47_vm1, 9.0, %v150_v9  ;;  %p127_p13 = por %p126_p12, %p125_p11 }
  0x22   :  { %v54_v13 = vmul.f32 %v52_v8, %v48_v10  ;;  %v55_v14 = vmul.f32 %v53_v11, %v49_v12 }
  0x23   :  { %p128_p0 = pnand %p127_p13, %p121_p10 }
  0x24   :  { %v56_v15 = vadd.f32 %v55_v14, %v54_v13 }
  0x26   :  { %57 = vst [vmem:[#allocation7] sm:$0xff] %v56_v15 }
  0x27   :  { %131 = shalt.err (!%p128_p0)
}
  0x28   :  { %67 = dma.vmem_to_hbm [thread:$0]  %s65_s1, 128, %s178_s2, [#allocation4]  }
  0x29   :  { %144 = dma.done.wait [#allocation4], 128  }
  0x2a   :  { %145 = vsyncadd [#allocation4], 4294967168 }
  0x2b   :  { %71 = vsyncpa [#allocation3], 1 }
  0x2c   :  { %72 = vsyncpa [#allocation6], 1 }
  0x2d   :  { %73 = vsyncpa [#allocation4], 1 }

</bundles_post_ra>
